<compile_context>
chip_gen: v6e
topology: v6e:2x2x1
jax: 0.10.0
libtpu: 0.0.40
codegen_flags: <defaults>
</compile_context>

<pallas_src>
import functools

import jax
import jax.numpy as jnp
from jax.experimental import pallas as pl
from jax.experimental.pallas import tpu as pltpu


# --------------------------------------------------------------------------------------
# Hardware-derived budgets
# --------------------------------------------------------------------------------------
def _vmem_capacity_bytes():
    try:
        info = pltpu.get_tpu_info()
        for attr in ("vmem_capacity_bytes", "vmem_bytes", "vmem_size_bytes"):
            v = getattr(info, attr, None)
            if v:
                return int(v)
    except Exception:
        pass
    # Conservative fallback (v7x-sized VMEM) if the query is unavailable.
    return 64 * 1024 * 1024


def _budgets():
    vmem_cap = _vmem_capacity_bytes()
    # v5e/v6e (128 MiB): 96 MiB scoped limit, 8 MiB blocks.
    # v7x    (64 MiB):   48 MiB scoped limit, 4 MiB blocks.
    vmem_limit = min(int(vmem_cap * 3 // 4), 96 * 1024 * 1024)
    max_block_bytes = (8 << 20) if vmem_cap >= (96 << 20) else (4 << 20)
    return vmem_limit, max_block_bytes


def _pick_hw_tile(HW, C, max_block_bytes, hw_tile=None):
    """Largest lane-dense (multiple-of-128) tile of the flattened H*W axis that keeps a
    (C, tile) f32 block under max_block_bytes.  No divisibility requirement: the grid is
    pl.cdiv(HW, tile) and the partial last tile is masked (pool) / write-discarded
    (apply).  If the whole axis fits, use a single full-extent block."""
    itemsize = 4
    cap = max(128, (max_block_bytes // max(C * itemsize, 1)) // 128 * 128)
    if hw_tile is not None:
        cap = min(cap, max(128, (hw_tile // 128) * 128))
    if HW <= cap:
        return HW
    return cap


# --------------------------------------------------------------------------------------
# Fused single-pass kernel: pool -> MLP -> sigmoid -> sSE -> combine, grid=(N,)
# --------------------------------------------------------------------------------------
def _scse_fused_kernel(x_ref, w1_ref, b1_ref, w2_ref, b2_ref, ws_ref, bs_ref, o_ref,
                       *, inv_hw):
    x = x_ref[0]                                              # (C, HW) f32
    # cSE: global average pool over the flattened spatial axis (lane reduce).
    pooled = jnp.sum(x, axis=1, keepdims=True) * inv_hw       # (C, 1)
    h = jnp.dot(w1_ref[...], pooled,
                preferred_element_type=jnp.float32) + b1_ref[...]        # (mid, 1)
    h = jnp.maximum(h, 0.0)
    c = jnp.dot(w2_ref[...], h,
                preferred_element_type=jnp.float32) + b2_ref[...]        # (C, 1)
    c_att = jax.nn.sigmoid(c)
    # sSE: 1x1 conv C -> 1 as VPU multiply + sublane reduce (no skinny MXU matvec).
    s = jnp.sum(x * ws_ref[...], axis=0, keepdims=True) + bs_ref[...]    # (1, HW)
    s_att = jax.nn.sigmoid(s)
    # Fused combine: x*cSE + x*sSE == x * (cSE + sSE) -> one multiply per element.
    o_ref[0] = x * (c_att + s_att)


def _scse_fused(x3, w1, b1c, w2, b2c, wsc, bsc, vmem_limit, donate_x):
    N, C, HW = x3.shape
    mid = w1.shape[0]
    return pl.pallas_call(
        functools.partial(_scse_fused_kernel, inv_hw=1.0 / HW),
        out_shape=jax.ShapeDtypeStruct((N, C, HW), jnp.float32),
        grid_spec=pltpu.PrefetchScalarGridSpec(
            num_scalar_prefetch=0,
            grid=(N,),
            in_specs=[
                pl.BlockSpec((1, C, HW), lambda n: (n, 0, 0)),   # x slab (resident)
                pl.BlockSpec((mid, C), lambda n: (0, 0)),        # w1
                pl.BlockSpec((mid, 1), lambda n: (0, 0)),        # b1
                pl.BlockSpec((C, mid), lambda n: (0, 0)),        # w2
                pl.BlockSpec((C, 1), lambda n: (0, 0)),          # b2
                pl.BlockSpec((C, 1), lambda n: (0, 0)),          # ws
                pl.BlockSpec((1, 1), lambda n: (0, 0)),          # bs
            ],
            out_specs=pl.BlockSpec((1, C, HW), lambda n: (n, 0, 0)),
        ),
        compiler_params=pltpu.CompilerParams(
            dimension_semantics=("parallel",),
            vmem_limit_bytes=vmem_limit),
        input_output_aliases=({0: 0} if donate_x else {}),
    )(x3, w1, b1c, w2, b2c, wsc, bsc)


# --------------------------------------------------------------------------------------
# Two-pass fallback (slab does not fit VMEM)
# --------------------------------------------------------------------------------------
def _pool_sums_kernel(x_ref, sums_ref, *, n_split, tiles_per_split, thw, hw, need_mask):
    """Pass 1: per-(batch, split-half) channel sums.  Grid = (N*n_split, tiles_per_split);
    the trailing 'arbitrary' axis accumulates into the resident (1, C, 1) output block."""
    i = pl.program_id(0)
    t = pl.program_id(1)

    @pl.when(t == 0)
    def _init():
        sums_ref[...] = jnp.zeros_like(sums_ref)

    x = x_ref[0]                                              # (C, thw) f32
    if need_mask:
        # Mask padded lanes of the partial last tile and any clamped duplicate tile.
        logical_tile = (i % n_split) * tiles_per_split + t
        cols = logical_tile * thw + jax.lax.broadcasted_iota(jnp.int32, x.shape, 1)
        x = jnp.where(cols < hw, x, 0.0)
    sums_ref[0] += jnp.sum(x, axis=1, keepdims=True)          # (C, 1)


def _scse_apply_kernel(x_ref, catt_ref, ws_ref, bs_ref, o_ref):
    """Pass 2: sSE (VPU multiply + sublane reduce) + fused combine."""
    x = x_ref[0]                                              # (C, thw) f32
    c_att = catt_ref[0]                                       # (C, 1)
    s = jnp.sum(x * ws_ref[...], axis=0, keepdims=True) + bs_ref[...]    # (1, thw)
    o_ref[0] = x * (c_att + jax.nn.sigmoid(s))


def _scse_two_pass(x3, w1, b1, w2, b2, wsc, bsc, thw, vmem_limit, donate_x):
    N, C, HW = x3.shape
    tiles_total = pl.cdiv(HW, thw)
    # Split the HW-tile axis in two and fold it into the parallel axis so both v7x
    # TensorCores stay busy even at N=1 (harmless on single-core v5e/v6e).
    n_split = 2 if tiles_total >= 2 else 1
    tiles_per_split = pl.cdiv(tiles_total, n_split)
    need_mask = (n_split * tiles_per_split * thw) != HW

    def x_map(i, t):
        blk = (i % n_split) * tiles_per_split + t
        return (i // n_split, 0, jnp.minimum(blk, tiles_total - 1))

    # ---- Pass 1: partial channel sums (N*n_split, C, 1) ------------------------------
    partial = pl.pallas_call(
        functools.partial(_pool_sums_kernel, n_split=n_split,
                          tiles_per_split=tiles_per_split, thw=thw, hw=HW,
                          need_mask=need_mask),
        out_shape=jax.ShapeDtypeStruct((N * n_split, C, 1), jnp.float32),
        grid_spec=pltpu.PrefetchScalarGridSpec(
            num_scalar_prefetch=0,
            grid=(N * n_split, tiles_per_split),
            in_specs=[pl.BlockSpec((1, C, thw), x_map)],
            out_specs=pl.BlockSpec((1, C, 1), lambda i, t: (i, 0, 0)),
        ),
        compiler_params=pltpu.CompilerParams(
            dimension_semantics=("parallel", "arbitrary"),
            vmem_limit_bytes=vmem_limit),
    )(x3)

    # Tiny batched C -> C/r -> C MLP + sigmoid for all N at once in plain XLA (keeps
    # skinny matvecs off the streaming kernels' hot path).
    sums = partial.reshape(N, n_split, C).sum(axis=1)         # (N, C)
    pooled = sums * (1.0 / HW)
    h = jnp.maximum(pooled @ w1.T + b1[None, :], 0.0)         # (N, mid)
    c_att = jax.nn.sigmoid(h @ w2.T + b2[None, :]).reshape(N, C, 1)

    # ---- Pass 2: out = x * (c_att + sSE(x)) -------------------------------------------
    # NOTE: pipeline_mode=pl.Buffered(3) on the x in_spec is a possible few-% win to
    # hide writeback jitter; left at the default pending a sweep.
    out3 = pl.pallas_call(
        _scse_apply_kernel,
        out_shape=jax.ShapeDtypeStruct((N, C, HW), jnp.float32),
        grid_spec=pltpu.PrefetchScalarGridSpec(
            num_scalar_prefetch=0,
            grid=(N, tiles_total),
            in_specs=[
                pl.BlockSpec((1, C, thw), lambda n, t: (n, 0, t)),   # x tile
                pl.BlockSpec((1, C, 1), lambda n, t: (n, 0, 0)),     # c_att (per batch)
                pl.BlockSpec((C, 1), lambda n, t: (0, 0)),           # ws
                pl.BlockSpec((1, 1), lambda n, t: (0, 0)),           # bs
            ],
            out_specs=pl.BlockSpec((1, C, thw), lambda n, t: (n, 0, t)),
        ),
        compiler_params=pltpu.CompilerParams(
            dimension_semantics=("parallel", "parallel"),
            vmem_limit_bytes=vmem_limit),
        input_output_aliases=({0: 0} if donate_x else {}),
    )(x3, c_att, wsc, bsc)
    return out3


# --------------------------------------------------------------------------------------
# Wrapper
# --------------------------------------------------------------------------------------
def scse_forward(x_nchw, params, *, hw_tile=None, force_two_pass=False, donate_x=False):
    """x_nchw: [N, C, H, W] float32. params: dict of SCSE weights.
    donate_x: set True (and donate x at the jit boundary) to alias the output onto x."""
    N, C, H, W = x_nchw.shape
    HW = H * W
    # Free reshape (contiguous merge of H, W); no transpose, no extra HBM traffic.
    x3 = x_nchw.reshape(N, C, HW)

    w1, b1 = params["w1"], params["b1"]          # (mid, C), (mid,)
    w2, b2 = params["w2"], params["b2"]          # (C, mid), (C,)
    ws, bs = params["ws"], params["bs"]          # (1, C),   (1,)
    mid = w1.shape[0]

    b1c = b1.reshape(mid, 1)
    b2c = b2.reshape(C, 1)
    wsc = ws.reshape(C, 1)
    bsc = bs.reshape(1, 1)

    vmem_limit, max_block_bytes = _budgets()

    # Fused single-pass path if the per-batch slab fits (2x-in + 2x-out double buffers
    # plus weights and headroom inside the scoped VMEM limit).
    slab_bytes = C * HW * 4
    w_bytes = 4 * (w1.size + w2.size + b1.size + b2.size + ws.size + bs.size)
    fused_fit = (4 * slab_bytes + 4 * w_bytes + (2 << 20)) <= vmem_limit

    if fused_fit and not force_two_pass:
        out3 = _scse_fused(x3, w1, b1c, w2, b2c, wsc, bsc, vmem_limit, donate_x)
    else:
        thw = _pick_hw_tile(HW, C, max_block_bytes, hw_tile=hw_tile)
        out3 = _scse_two_pass(x3, w1, b1, w2, b2, wsc, bsc, thw, vmem_limit, donate_x)

    return out3.reshape(N, C, H, W)


# --------------------------------------------------------------------------------------
# Params / reference
# --------------------------------------------------------------------------------------
def init_params(key, in_channels, reduction=16):
    mid = in_channels // reduction
    assert mid >= 1, "in_channels // reduction must be >= 1"
    k1, k2, k3, k4, k5, k6 = jax.random.split(key, 6)
    scale = 0.1
    return {
        # nn.Conv2d(C, mid, 1): weight (mid, C, 1, 1) -> (mid, C)
        "w1": scale * jax.random.normal(k1, (mid, in_channels), jnp.float32),
        "b1": scale * jax.random.normal(k2, (mid,), jnp.float32),
        # nn.Conv2d(mid, C, 1): weight (C, mid, 1, 1) -> (C, mid)
        "w2": scale * jax.random.normal(k3, (in_channels, mid), jnp.float32),
        "b2": scale * jax.random.normal(k4, (in_channels,), jnp.float32),
        # nn.Conv2d(C, 1, 1): weight (1, C, 1, 1) -> (1, C)
        "ws": scale * jax.random.normal(k5, (1, in_channels), jnp.float32),
        "bs": scale * jax.random.normal(k6, (1,), jnp.float32),
    }


def scse_reference(x, p):
    """Pure-JAX reference matching the PyTorch forward (NCHW)."""
    pooled = jnp.mean(x, axis=(2, 3), keepdims=True)                      # (N, C, 1, 1)
    h = jnp.einsum("ncij,mc->nmij", pooled, p["w1"]) + p["b1"][None, :, None, None]
    h = jnp.maximum(h, 0.0)
    c = jnp.einsum("nmij,cm->ncij", h, p["w2"]) + p["b2"][None, :, None, None]
    c = jax.nn.sigmoid(c)                                                 # (N, C, 1, 1)
    s = jnp.einsum("nchw,oc->nohw", x, p["ws"]) + p["bs"][None, :, None, None]
    s = jax.nn.sigmoid(s)                                                 # (N, 1, H, W)
    return x * c + x * s


if __name__ == "__main__":
    key = jax.random.PRNGKey(0)
    kx, kp = jax.random.split(key)

    # --- Case 1: default (fused single-pass) path -------------------------------------
    N, C, H, W = 2, 64, 16, 16
    x = jax.random.normal(kx, (N, C, H, W), jnp.float32)
    params = init_params(kp, C, reduction=16)
    ref = scse_reference(x, params)

    out = jax.block_until_ready(jax.jit(scse_forward)(x, params))
    assert out.shape == ref.shape
    assert jnp.allclose(out, ref, atol=1e-5, rtol=1e-5), "fused path mismatch"

    # --- Case 2: forced two-pass tiled path (pool + apply kernels, split pooling) -----
    fwd2 = jax.jit(functools.partial(scse_forward, force_two_pass=True, hw_tile=128))
    out2 = jax.block_until_ready(fwd2(x, params))
    assert jnp.allclose(out2, ref, atol=1e-5, rtol=1e-5), "two-pass path mismatch"

    # --- Case 3: non-128-aligned spatial size exercising the masked partial tile ------
    kx3, kp3 = jax.random.split(jax.random.PRNGKey(0), 2)
    x3 = jax.random.normal(kx3, (1, 32, 10, 20), jnp.float32)             # HW = 200
    params3 = init_params(kp3, 32, reduction=8)
    ref3 = scse_reference(x3, params3)
    fwd3 = jax.jit(functools.partial(scse_forward, force_two_pass=True, hw_tile=128))
    out3 = jax.block_until_ready(fwd3(x3, params3))
    assert jnp.allclose(out3, ref3, atol=1e-5, rtol=1e-5), "masked-tile path mismatch"

    print("KERNEL_OK")
</pallas_src>

<mosaic_0001>
module attributes {stable_mosaic.version = 11 : i64} {
  func.func @_scse_fused_kernel(%arg0: i32, %arg1: memref<1x64x256xf32, #tpu.memory_space<vmem>>, %arg2: memref<4x64xf32, #tpu.memory_space<vmem>>, %arg3: memref<4x1xf32, #tpu.memory_space<vmem>>, %arg4: memref<64x4xf32, #tpu.memory_space<vmem>>, %arg5: memref<64x1xf32, #tpu.memory_space<vmem>>, %arg6: memref<64x1xf32, #tpu.memory_space<vmem>>, %arg7: memref<1x1xf32, #tpu.memory_space<vmem>>, %arg8: memref<1x64x256xf32, #tpu.memory_space<vmem>>) attributes {dimension_semantics = [#tpu.dimension_semantics<parallel>], iteration_bounds = array<i64: 2>, scalar_prefetch = 0 : i64, scratch_operands = 0 : i64, tpu.core_type = #tpu.core_type<tc>, window_params = [{transform_indices = @transform_0, window_bounds = array<i64: 1, 64, 256>}, {pipeline_mode = #tpu.pipeline_mode<synchronous>, transform_indices = @transform_1, window_bounds = array<i64: 4, 64>}, {pipeline_mode = #tpu.pipeline_mode<synchronous>, transform_indices = @transform_2, window_bounds = array<i64: 4, 1>}, {pipeline_mode = #tpu.pipeline_mode<synchronous>, transform_indices = @transform_3, window_bounds = array<i64: 64, 4>}, {pipeline_mode = #tpu.pipeline_mode<synchronous>, transform_indices = @transform_4, window_bounds = array<i64: 64, 1>}, {pipeline_mode = #tpu.pipeline_mode<synchronous>, transform_indices = @transform_5, window_bounds = array<i64: 64, 1>}, {pipeline_mode = #tpu.pipeline_mode<synchronous>, transform_indices = @transform_6, window_bounds = array<i64: 1, 1>}, {transform_indices = @transform_7, window_bounds = array<i64: 1, 64, 256>}]} {
    %c0 = arith.constant 0 : index
    %c0_0 = arith.constant 0 : index
    %c0_1 = arith.constant 0 : index
    %0 = vector.load %arg1[%c0, %c0_0, %c0_1] : memref<1x64x256xf32, #tpu.memory_space<vmem>>, vector<1x64x256xf32>
    %1 = vector.shape_cast %0 : vector<1x64x256xf32> to vector<64x256xf32>
    %cst = arith.constant dense<0.000000e+00> : vector<64xf32>
    %2 = vector.multi_reduction <add>, %1, %cst [1] : vector<64x256xf32> to vector<64xf32>
    %3 = vector.shape_cast %2 : vector<64xf32> to vector<64x1xf32>
    %cst_2 = arith.constant 3.906250e-03 : f32
    %4 = vector.broadcast %cst_2 : f32 to vector<64x1xf32>
    %5 = arith.mulf %3, %4 : vector<64x1xf32>
    %c0_3 = arith.constant 0 : index
    %c0_4 = arith.constant 0 : index
    %6 = vector.load %arg2[%c0_3, %c0_4] : memref<4x64xf32, #tpu.memory_space<vmem>>, vector<4x64xf32>
    %cst_5 = arith.constant dense<0.000000e+00> : vector<4x1xf32>
    %7 = tpu.matmul %6, %5, %cst_5 {dimension_numbers = #tpu.dot_dimension_numbers<[1], [0], [0], [1], [0, 0, 1, 1], [], []>} : vector<4x64xf32>, vector<64x1xf32>, vector<4x1xf32> -> vector<4x1xf32>
    %c0_6 = arith.constant 0 : index
    %c0_7 = arith.constant 0 : index
    %8 = vector.load %arg3[%c0_6, %c0_7] : memref<4x1xf32, #tpu.memory_space<vmem>>, vector<4x1xf32>
    %9 = arith.addf %7, %8 : vector<4x1xf32>
    %cst_8 = arith.constant 0.000000e+00 : f32
    %10 = vector.broadcast %cst_8 : f32 to vector<4x1xf32>
    %11 = arith.maximumf %9, %10 : vector<4x1xf32>
    %c0_9 = arith.constant 0 : index
    %c0_10 = arith.constant 0 : index
    %12 = vector.load %arg4[%c0_9, %c0_10] : memref<64x4xf32, #tpu.memory_space<vmem>>, vector<64x4xf32>
    %cst_11 = arith.constant dense<0.000000e+00> : vector<64x1xf32>
    %13 = tpu.matmul %12, %11, %cst_11 {dimension_numbers = #tpu.dot_dimension_numbers<[1], [0], [0], [1], [0, 0, 1, 1], [], []>} : vector<64x4xf32>, vector<4x1xf32>, vector<64x1xf32> -> vector<64x1xf32>
    %c0_12 = arith.constant 0 : index
    %c0_13 = arith.constant 0 : index
    %14 = vector.load %arg5[%c0_12, %c0_13] : memref<64x1xf32, #tpu.memory_space<vmem>>, vector<64x1xf32>
    %15 = arith.addf %13, %14 : vector<64x1xf32>
    %16 = arith.negf %15 : vector<64x1xf32>
    %17 = math.exp %16 : vector<64x1xf32>
    %cst_14 = arith.constant 1.000000e+00 : f32
    %18 = vector.broadcast %cst_14 : f32 to vector<64x1xf32>
    %19 = arith.addf %18, %17 : vector<64x1xf32>
    %20 = arith.divf %18, %19 : vector<64x1xf32>
    %c0_15 = arith.constant 0 : index
    %c0_16 = arith.constant 0 : index
    %21 = vector.load %arg6[%c0_15, %c0_16] : memref<64x1xf32, #tpu.memory_space<vmem>>, vector<64x1xf32>
    %22 = vector.broadcast %21 : vector<64x1xf32> to vector<64x256xf32>
    %23 = arith.mulf %1, %22 : vector<64x256xf32>
    %cst_17 = arith.constant dense<0.000000e+00> : vector<256xf32>
    %24 = vector.multi_reduction <add>, %23, %cst_17 [0] : vector<64x256xf32> to vector<256xf32>
    %25 = vector.shape_cast %24 : vector<256xf32> to vector<1x256xf32>
    %c0_18 = arith.constant 0 : index
    %c0_19 = arith.constant 0 : index
    %26 = vector.load %arg7[%c0_18, %c0_19] : memref<1x1xf32, #tpu.memory_space<vmem>>, vector<1x1xf32>
    %27 = vector.broadcast %26 : vector<1x1xf32> to vector<1x256xf32>
    %28 = arith.addf %25, %27 : vector<1x256xf32>
    %29 = arith.negf %28 : vector<1x256xf32>
    %30 = math.exp %29 : vector<1x256xf32>
    %cst_20 = arith.constant 1.000000e+00 : f32
    %31 = vector.broadcast %cst_20 : f32 to vector<1x256xf32>
    %32 = arith.addf %31, %30 : vector<1x256xf32>
    %33 = arith.divf %31, %32 : vector<1x256xf32>
    %34 = vector.broadcast %20 : vector<64x1xf32> to vector<64x256xf32>
    %35 = vector.broadcast %33 : vector<1x256xf32> to vector<64x256xf32>
    %36 = arith.addf %34, %35 : vector<64x256xf32>
    %37 = arith.mulf %1, %36 : vector<64x256xf32>
    %c0_21 = arith.constant 0 : index
    %c0_22 = arith.constant 0 : index
    %c0_23 = arith.constant 0 : index
    %38 = vector.load %arg8[%c0_21, %c0_22, %c0_23] : memref<1x64x256xf32, #tpu.memory_space<vmem>>, vector<1x64x256xf32>
    %39 = vector.shape_cast %38 : vector<1x64x256xf32> to vector<64x256xf32>
    %40 = vector.shape_cast %37 : vector<64x256xf32> to vector<1x64x256xf32>
    tpu.vector_store %arg8[%c0_21, %c0_22, %c0_23], %40 {strides = array<i32>} : memref<1x64x256xf32, #tpu.memory_space<vmem>>, vector<1x64x256xf32>,
    return
  }
  func.func @transform_0(%arg0: i32) -> (i32, i32, i32) {
    %c0_i32 = arith.constant 0 : i32
    %c0_i32_0 = arith.constant 0 : i32
    %c0_i32_1 = arith.constant 0 : i32
    return %arg0, %c0_i32, %c0_i32_0 : i32, i32, i32
  }
  func.func @transform_1(%arg0: i32) -> (i32, i32) {
    %c0_i32 = arith.constant 0 : i32
    %c0_i32_0 = arith.constant 0 : i32
    %c0_i32_1 = arith.constant 0 : i32
    return %c0_i32, %c0_i32_0 : i32, i32
  }
  func.func @transform_2(%arg0: i32) -> (i32, i32) {
    %c0_i32 = arith.constant 0 : i32
    %c0_i32_0 = arith.constant 0 : i32
    %c0_i32_1 = arith.constant 0 : i32
    return %c0_i32, %c0_i32_0 : i32, i32
  }
  func.func @transform_3(%arg0: i32) -> (i32, i32) {
    %c0_i32 = arith.constant 0 : i32
    %c0_i32_0 = arith.constant 0 : i32
    %c0_i32_1 = arith.constant 0 : i32
    return %c0_i32, %c0_i32_0 : i32, i32
  }
  func.func @transform_4(%arg0: i32) -> (i32, i32) {
    %c0_i32 = arith.constant 0 : i32
    %c0_i32_0 = arith.constant 0 : i32
    %c0_i32_1 = arith.constant 0 : i32
    return %c0_i32, %c0_i32_0 : i32, i32
  }
  func.func @transform_5(%arg0: i32) -> (i32, i32) {
    %c0_i32 = arith.constant 0 : i32
    %c0_i32_0 = arith.constant 0 : i32
    %c0_i32_1 = arith.constant 0 : i32
    return %c0_i32, %c0_i32_0 : i32, i32
  }
  func.func @transform_6(%arg0: i32) -> (i32, i32) {
    %c0_i32 = arith.constant 0 : i32
    %c0_i32_0 = arith.constant 0 : i32
    %c0_i32_1 = arith.constant 0 : i32
    return %c0_i32, %c0_i32_0 : i32, i32
  }
  func.func @transform_7(%arg0: i32) -> (i32, i32, i32) {
    %c0_i32 = arith.constant 0 : i32
    %c0_i32_0 = arith.constant 0 : i32
    %c0_i32_1 = arith.constant 0 : i32
    return %arg0, %c0_i32, %c0_i32_0 : i32, i32, i32
  }
}

</mosaic_0001>

<bundles_post_ra>
// kernel: scse_forward.1
= control target key start
LH: loop header
LB: loop body
LE: loop exit
PB: predicated region body
PF: predicated region fallthrough
CT: control target
= control target key end

     0   :  { %s1052_s26 = smov 0   ;;  %s1260_s0 = inlined_call_operand.vmem [shape: f32[2,64,256], index: 0, kind: input, shape index: {}]   ;;  %s1261_s1 = inlined_call_operand.vmem [shape: f32[4,64], index: 1, kind: input, shape index: {}]   ;;  %s1262_s2 = inlined_call_operand.vmem [shape: f32[4,1], index: 2, kind: input, shape index: {}]   ;;  %s1263_s3 = inlined_call_operand.vmem [shape: f32[64,4], index: 3, kind: input, shape index: {}]   ;;  %s1264_s4 = inlined_call_operand.vmem [shape: f32[64,1], index: 4, kind: input, shape index: {}]   ;;  %s1265_s5 = inlined_call_operand.vmem [shape: f32[64,1], index: 5, kind: input, shape index: {}]   ;;  %s1266_s6 = inlined_call_operand.<no memory space> [shape: f32[1,1], index: 6, kind: input, shape index: {}]   ;;  %s1267_s7 = inlined_call_operand.vmem [shape: f32[2,64,256], index: 7, kind: output, shape index: {}]  }
   0x1   :  { %v12_v0 = vstv %s1266_s6 }
   0x2   :  { %13 = vst [vmem:[#allocation2] sm:$0x1] %v12_v0 }
   0x3 LB: > { %s861_s27 = sadd.s32 4294967295, %s1004_s26   ;;  %p865_p0 = scmp.ge.s32.totalorder %s1004_s26, 1  ;;  %s1004_s26 = sphi %s1052_s26, %s19_s26  }
   0x4   : > { %p239_p1 = scmp.lt.s32.totalorder %s1004_s26, 3 }
   0x6   : > { %p240_p2 = pnand %p865_p0, %p239_p1 }
   0x7   : > { %p271_p3 = scmp.lt.s32.totalorder (!%p240_p2), %s861_s27, 1 }
   0x8   : > { %243 = sbr.rel (%p240_p2) target bundleno = 745 (0x2e9), region = 48 }
   0xd   : > { %s1269_s27 = smov (!%p271_p3, %s861_s27), 1  ;;  %v1006_v25 = vmov 0.0   ;;  %vm1007_vm0 = vmmov 0   ;;  %v329_v42 = vld [vmem:[%s1261_s1] sm:$0xf]  ;;  %vm331_vm1 = vcmask 523264  }
   0xe   : > { %s892_s6 = sshll.u32 %s1269_s27, 7  ;;  %912 = vmatprep.subr.mxu0 %v1006_v25  ;;  %928 = vmatprep.mubr.msk.f32.mxu0 %vm1007_vm0, %v1006_v25  ;;  %v406_v43 = vld [vmem:[%s1263_s3] sm:$0xff]  ;;  %vm422_vm2 = vcmask 31744   ;;  %v605_v44 = vld [vmem:[%s1265_s5 + $0x8] sm:$0xff]  ;;  %v1008_v45 = vmov 0   ;;  %v606_v47 = vld [vmem:[%s1265_s5 + $0x10] sm:$0xff] }
   0xf   : > { %s275_s30 = scalar_lea.vmem %s1260_s0, %s892_s6  ;;  %933 = vmatprep.mubr.msk.f32.mxu1 %vm422_vm2, %v406_v43  ;;  %957 = vset.pattern.permute.xlu1 %v1008_v45  ;;  %v604_v46 = vld [vmem:[%s1265_s5] sm:$0xff]  ;;  %v607_v48 = vld [vmem:[%s1265_s5 + $0x18] sm:$0xff]  ;;  %v609_v50 = vld [vmem:[%s1265_s5 + $0x28] sm:$0xff]  ;;  %vm447_vm3 = vcmask 1043456   ;;  %s1223_s20 = scalar_lea.vmem %s1267_s7, %s892_s6 }
  0x10   : > { %v1068_v1 = vld [vmem:[%s275_s30 + $0x70] sm:$0xff]  ;;  %v1070_v2 = vld [vmem:[%s275_s30 + $0x78] sm:$0xff]  ;;  %v1072_v3 = vld [vmem:[%s275_s30 + $0x60] sm:$0xff]  ;;  %956 = vset.pattern.permute.xlu0 %v1008_v45 }
  0x11   : > { %v318_v4 = vadd.f32 %v1070_v2, %v1068_v1  ;;  %v1076_v5 = vld [vmem:[%s275_s30 + $0x68] sm:$0xff]  ;;  %v1078_v6 = vld [vmem:[%s275_s30 + $0x50] sm:$0xff]  ;;  %v1080_v7 = vld [vmem:[%s275_s30 + $0x58] sm:$0xff] }
  0x12   : > { %v312_v8 = vadd.f32 %v1080_v7, %v1078_v6  ;;  %v1084_v9 = vld [vmem:[%s275_s30 + $0x40] sm:$0xff]  ;;  %v1086_v10 = vld [vmem:[%s275_s30 + $0x48] sm:$0xff]  ;;  %v315_v11 = vadd.f32 %v1076_v5, %v1072_v3  ;;  %v1092_v13 = vld [vmem:[%s275_s30 + $0x30] sm:$0xff] }
  0x13   : > { %319 = vadd.xlane.f32.xlu0 %v318_v4  ;;  %v309_v12 = vadd.f32 %v1086_v10, %v1084_v9  ;;  %v1094_v14 = vld [vmem:[%s275_s30 + $0x38] sm:$0xff]  ;;  %v1096_v15 = vld [vmem:[%s275_s30 + $0x20] sm:$0xff]  ;;  %v1098_v16 = vld [vmem:[%s275_s30 + $0x28] sm:$0xff] }
  0x14   : > { %313 = vadd.xlane.f32.xlu1 %v312_v8  ;;  %v306_v17 = vadd.f32 %v1094_v14, %v1092_v13  ;;  %v303_v18 = vadd.f32 %v1098_v16, %v1096_v15  ;;  %v1104_v19 = vld [vmem:[%s275_s30 + $0x10] sm:$0xff]  ;;  %v1106_v20 = vld [vmem:[%s275_s30 + $0x18] sm:$0xff]  ;;  %v1108_v21 = vld [vmem:[%s275_s30] sm:$0xff] }
  0x15   : > { %v1110_v22 = vld [vmem:[%s275_s30 + $0x8] sm:$0xff]  ;;  %v300_v23 = vadd.f32 %v1106_v20, %v1104_v19  ;;  %v608_v49 = vld [vmem:[%s1265_s5 + $0x20] sm:$0xff]  ;;  %v610_v51 = vld [vmem:[%s1265_s5 + $0x30] sm:$0xff] }
  0x16   : > { %v297_v24 = vadd.f32 %v1110_v22, %v1108_v21  ;;  %v611_v52 = vld [vmem:[%s1265_s5 + $0x38] sm:$0xff]  ;;  %v694_v53 = vld [vmem:[#allocation2] sm:$0x1]  ;;  %v407_v59 = vld [vmem:[%s1263_s3 + $0x8] sm:$0xff] }
  0x17   : > { %316 = vadd.xlane.f32.xlu0 %v315_v11  ;;  %v330_v54 = vld [vmem:[%s1262_s2] sm:$0xf]  ;;  %v408_v60 = vld [vmem:[%s1263_s3 + $0x10] sm:$0xff]  ;;  %v409_v61 = vld [vmem:[%s1263_s3 + $0x18] sm:$0xff] }
  0x18   : > { %310 = vadd.xlane.f32.xlu1 %v309_v12  ;;  %v410_v62 = vld [vmem:[%s1263_s3 + $0x20] sm:$0xff]  ;;  %v411_v63 = vld [vmem:[%s1263_s3 + $0x28] sm:$0xff]  ;;  %v412_v0 = vld [vmem:[%s1263_s3 + $0x30] sm:$0xff] }
  0x19   : > { %v413_v4 = vld [vmem:[%s1263_s3 + $0x38] sm:$0xff]  ;;  %v415_v8 = vld [vmem:[%s1264_s4 + $0x8] sm:$0xff]  ;;  %v414_v12 = vld [vmem:[%s1264_s4] sm:$0xff] }
  0x1a   : > { %v420_v43 = vld [vmem:[%s1264_s4 + $0x30] sm:$0xff] }
  0x1b   : > { %307 = vadd.xlane.f32.xlu0 %v306_v17 }
  0x1c   : > { %304 = vadd.xlane.f32.xlu1 %v303_v18 }
  0x1f   : > { %301 = vadd.xlane.f32.xlu0 %v300_v23  ;;  %v417_v23 = vld [vmem:[%s1264_s4 + $0x18] sm:$0xff] }
  0x20   : > { %298 = vadd.xlane.f32.xlu1 %v297_v24 }
  0x31   : > { %619 = vperm.xlu1 %957, %v605_v44  }
  0x35   : > { %614 = vperm.xlu0 %956, %v604_v46   ;;  %624 = vperm.xlu1 %957, %v606_v47  }
  0x39   : > { %629 = vperm.xlu1 %957, %v607_v48  }
  0x3d   : > { %634 = vperm.xlu1 %957, %v608_v49  }
  0x41   : > { %639 = vperm.xlu1 %957, %v609_v50  }
  0x45   : > { %644 = vperm.xlu1 %957, %v610_v51  }
  0x49   : > { %649 = vperm.xlu1 %957, %v611_v52  }
  0x4d   : > { %697 = vperm.xlu1 %957, %v694_v53  }
  0x9c   : > { %v320_v26 = vpop.xlane.xlu0 %319 }
  0x9d   : > { %v328_v27 = vmul.f32 0.00390625, %v320_v26  ;;  %v314_v28 = vpop.xlane.xlu1 %313 }
  0x9e   : > { %v326_v32 = vmul.f32 0.00390625, %v314_v28 }
  0x9f   : > { %913 = vmatpush3.msra.mxu0 %v328_v27  ;;  %v416_v27 = vld [vmem:[%s1264_s4 + $0x10] sm:$0xff] }
  0xa0   : > { %v317_v29 = vpop.xlane.xlu0 %316  ;;  %914 = vmatprep.subr.mxu0 %v1006_v25 }
  0xa1   : > { %v327_v30 = vmul.f32 0.00390625, %v317_v29  ;;  %v311_v31 = vpop.xlane.xlu1 %310 }
  0xa2   : > { %v325_v33 = vmul.f32 0.00390625, %v311_v31  ;;  %v419_v31 = vld [vmem:[%s1264_s4 + $0x28] sm:$0xff] }
  0xa3   : > { %915 = vmatpush3.msra.mxu0 %v327_v30 }
  0xa4   : > { %916 = vmatprep.subr.mxu0 %v1006_v25  ;;  %v308_v34 = vpop.xlane.xlu0 %307 }
  0xa5   : > { %917 = vmatpush3.msra.mxu0 %v326_v32  ;;  %v324_v35 = vmul.f32 0.00390625, %v308_v34  ;;  %v305_v36 = vpop.xlane.xlu1 %304 }
  0xa6   : > { %918 = vmatprep.subr.mxu0 %v1006_v25  ;;  %v323_v37 = vmul.f32 0.00390625, %v305_v36 }
  0xa7   : > { %919 = vmatpush3.msra.mxu0 %v325_v33 }
  0xa8   : > { %920 = vmatprep.subr.mxu0 %v1006_v25  ;;  %v302_v38 = vpop.xlane.xlu0 %301 }
  0xa9   : > { %921 = vmatpush3.msra.mxu0 %v324_v35  ;;  %v322_v39 = vmul.f32 0.00390625, %v302_v38  ;;  %v299_v40 = vpop.xlane.xlu1 %298  ;;  %v418_v35 = vld [vmem:[%s1264_s4 + $0x20] sm:$0xff] }
  0xaa   : > { %922 = vmatprep.subr.mxu0 %v1006_v25  ;;  %v321_v41 = vmul.f32 0.00390625, %v299_v40 }
  0xab   : > { %923 = vmatpush3.msra.mxu0 %v323_v37 }
  0xac   : > { %924 = vmatprep.subr.mxu0 %v1006_v25 }
  0xad   : > { %925 = vmatpush3.msra.mxu0 %v322_v39  ;;  %v421_v39 = vld [vmem:[%s1264_s4 + $0x38] sm:$0xff] }
  0xae   : > { %926 = vmatprep.subr.mxu0 %v1006_v25 }
  0xaf   : > { %927 = vmatpush3.msra.mxu0 %v321_v41 }
  0xb0   : > { %929 = vmatmul.mubr.msk.f32.vlgmr.msra.gmra.mxu0 %vm331_vm1, %v329_v42 }
 0x170   : > { %v401_v55 = vpop.f32.mrf.mxu0 }
 0x171   : > { %v402_v56 = vadd.f32 %v401_v55, %v330_v54 }
 0x172   : > { %v930_v57 = vpop.f32.mrf.mxu0 }
 0x173   : > { %v405_v58 = vmax.f32 %v402_v56, 0.0 }
 0x175   : > { %931 = vmatprep.subr.msk.mxu1 %vm447_vm3, %v405_v58 }
 0x176   : > { %932 = vmatpush3.msk.msra.mxu1 %vm447_vm3, %v405_v58 }
 0x177   : > { %934 = vmatmul.mubr.msk.f32.vlgmr.msra.gmra.mxu1 %vm422_vm2, %v407_v59 }
 0x178   : > { %936 = vmatprep.mubr.msk.f32.mxu1 %vm422_vm2, %v408_v60 }
 0x17b   : > { %937 = vmatmul.mubr.msk.f32.gmra.mxu1 %vm422_vm2, %v409_v61 }
 0x17c   : > { %939 = vmatprep.mubr.msk.f32.mxu1 %vm422_vm2, %v410_v62 }
 0x17f   : > { %940 = vmatmul.mubr.msk.f32.gmra.mxu1 %vm422_vm2, %v411_v63 }
 0x180   : > { %942 = vmatprep.mubr.msk.f32.mxu1 %vm422_vm2, %v412_v0 }
 0x183   : > { %943 = vmatmul.mubr.msk.f32.gmra.mxu1 %vm422_vm2, %v413_v4 }
 0x237   : > { %v935_v11 = vpop.f32.mrf.mxu1 }
 0x238   : > { %v523_v17 = vadd.f32 %v935_v11, %v415_v8 }
 0x239   : > { %v517_v18 = vpop.f32.mrf.mxu1 }
 0x23a   : > { %v881_v24 = vmul.f32 -1.442695, %v523_v17  ;;  %v518_v25 = vadd.f32 %v517_v18, %v414_v12 }
 0x23b   : > { %v938_v26 = vpop.f32.mrf.mxu1 }
 0x23c   : > { %958 = vpow2.f32 %v881_v24  ;;  %v880_v28 = vmul.f32 -1.442695, %v518_v25  ;;  %v533_v29 = vadd.f32 %v938_v26, %v417_v23  ;;  %v620_v24 = vpop.permute.xlu1 %619 }
 0x23d   : > { %v527_v30 = vpop.f32.mrf.mxu1 }
 0x23e   : > { %960 = vpow2.f32 %v880_v28  ;;  %v883_v32 = vmul.f32 -1.442695, %v533_v29  ;;  %v528_v33 = vadd.f32 %v527_v30, %v416_v27  ;;  %v615_v29 = vpop.permute.xlu0 %614  ;;  %v654_v30 = vmul.f32 %v620_v24, %v1104_v19 }
 0x23f   : > { %v941_v34 = vpop.f32.mrf.mxu1 }
 0x240   : > { %962 = vpow2.f32 %v883_v32  ;;  %v882_v36 = vmul.f32 -1.442695, %v528_v33  ;;  %v543_v37 = vadd.f32 %v941_v34, %v419_v31  ;;  %v625_v27 = vpop.permute.xlu1 %624  ;;  %v652_v31 = vmul.f32 %v615_v29, %v1108_v21 }
 0x241   : > { %v537_v38 = vpop.f32.mrf.mxu1  ;;  %v655_v32 = vmul.f32 %v620_v24, %v1106_v20  ;;  %v653_v33 = vmul.f32 %v615_v29, %v1110_v22 }
 0x242   : > { %964 = vpow2.f32 %v882_v36  ;;  %v885_v40 = vmul.f32 -1.442695, %v543_v37  ;;  %v538_v41 = vadd.f32 %v537_v38, %v418_v35  ;;  %v656_v35 = vmul.f32 %v625_v27, %v1096_v15 }
 0x243   : > { %v944_v42 = vpop.f32.mrf.mxu1  ;;  %v668_v36 = vadd.f32 %v654_v30, %v652_v31  ;;  %v657_v37 = vmul.f32 %v625_v27, %v1098_v16  ;;  %v681_v38 = vadd.f32 %v655_v32, %v653_v33 }
 0x244   : > { %966 = vpow2.f32 %v885_v40  ;;  %v884_v44 = vmul.f32 -1.442695, %v538_v41  ;;  %v553_v45 = vadd.f32 %v944_v42, %v421_v39  ;;  %v630_v28 = vpop.permute.xlu1 %629 }
 0x245   : > { %v547_v46 = vpop.f32.mrf.mxu1  ;;  %v658_v39 = vmul.f32 %v630_v28, %v1092_v13  ;;  %v669_v40 = vadd.f32 %v668_v36, %v656_v35  ;;  %v659_v41 = vmul.f32 %v630_v28, %v1094_v14  ;;  %v682_v42 = vadd.f32 %v681_v38, %v657_v37 }
 0x246   : > { %968 = vpow2.f32 %v884_v44  ;;  %v887_v47 = vmul.f32 -1.442695, %v553_v45  ;;  %v548_v48 = vadd.f32 %v547_v46, %v420_v43 }
 0x247   : > { %v670_v44 = vadd.f32 %v669_v40, %v658_v39  ;;  %v683_v46 = vadd.f32 %v682_v42, %v659_v41 }
 0x248   : > { %970 = vpow2.f32 %v887_v47  ;;  %v886_v49 = vmul.f32 -1.442695, %v548_v48  ;;  %v635_v34 = vpop.permute.xlu1 %634 }
 0x249   : > { %v959_v50 = vpop.eup %958  ;;  %v660_v45 = vmul.f32 %v635_v34, %v1084_v9  ;;  %v661_v47 = vmul.f32 %v635_v34, %v1086_v10 }
 0x24a   : > { %v581_v51 = vadd.f32 1.0, %v959_v50  ;;  %972 = vpow2.f32 %v886_v49 }
 0x24b   : > { %v961_v52 = vpop.eup %960  ;;  %v671_v49 = vadd.f32 %v670_v44, %v660_v45 }
 0x24c   : > { %974 = vrcp.f32 %v581_v51  ;;  %v580_v53 = vadd.f32 1.0, %v961_v52  ;;  %v640_v43 = vpop.permute.xlu1 %639  ;;  %v684_v51 = vadd.f32 %v683_v46, %v661_v47 }
 0x24d   : > { %v963_v54 = vpop.eup %962  ;;  %v662_v50 = vmul.f32 %v640_v43, %v1078_v6  ;;  %v663_v52 = vmul.f32 %v640_v43, %v1080_v7 }
 0x24e   : > { %976 = vrcp.f32 %v580_v53  ;;  %v583_v55 = vadd.f32 1.0, %v963_v54 }
 0x24f   : > { %v965_v56 = vpop.eup %964  ;;  %v672_v53 = vadd.f32 %v671_v49, %v662_v50 }
 0x250   : > { %978 = vrcp.f32 %v583_v55  ;;  %v582_v57 = vadd.f32 1.0, %v965_v56  ;;  %v645_v48 = vpop.permute.xlu1 %644  ;;  %v685_v55 = vadd.f32 %v684_v51, %v663_v52 }
 0x251   : > { %v967_v58 = vpop.eup %966  ;;  %v664_v54 = vmul.f32 %v645_v48, %v1072_v3  ;;  %v665_v56 = vmul.f32 %v645_v48, %v1076_v5 }
 0x252   : > { %980 = vrcp.f32 %v582_v57  ;;  %v585_v59 = vadd.f32 1.0, %v967_v58 }
 0x253   : > { %v969_v60 = vpop.eup %968  ;;  %v673_v58 = vadd.f32 %v672_v53, %v664_v54 }
 0x254   : > { %982 = vrcp.f32 %v585_v59  ;;  %v584_v61 = vadd.f32 1.0, %v969_v60  ;;  %v650_v57 = vpop.permute.xlu1 %649  ;;  %v686_v60 = vadd.f32 %v685_v55, %v665_v56 }
 0x255   : > { %v971_v62 = vpop.eup %970  ;;  %v666_v59 = vmul.f32 %v650_v57, %v1068_v1 }
 0x256   : > { %984 = vrcp.f32 %v584_v61  ;;  %v587_v63 = vadd.f32 1.0, %v971_v62  ;;  %v667_v61 = vmul.f32 %v650_v57, %v1070_v2 }
 0x257   : > { %v973_v0 = vpop.eup %972  ;;  %v674_v62 = vadd.f32 %v673_v58, %v666_v59 }
 0x258   : > { %986 = vrcp.f32 %v587_v63  ;;  %v586_v4 = vadd.f32 1.0, %v973_v0  ;;  %v687_v63 = vadd.f32 %v686_v60, %v667_v61  ;;  %v698_v29 = vpop.permute.xlu1 %697 }
 0x259   : > { %v975_v8 = vpop.eup %974  ;;  %v675_v0 = vrot.slane %v674_v62, 4 }
 0x25a   : > { %988 = vrcp.f32 %v586_v4  ;;  %725 = vperm.xlu1 %957, %v975_v8   ;;  %v688_v4 = vrot.slane %v687_v63, 4 }
 0x25b   : > { %v977_v11 = vpop.eup %976  ;;  %v676_v8 = vadd.f32 %v675_v0, %v674_v62 }
 0x25c   : > { %720 = vperm.xlu0 %956, %v977_v11   ;;  %v689_v11 = vadd.f32 %v688_v4, %v687_v63 }
 0x25d   : > { %v979_v12 = vpop.eup %978 }
 0x25e   : > { %735 = vperm.xlu1 %957, %v979_v12   ;;  %v677_v12 = vrot.slane %v676_v8, 2 }
 0x25f   : > { %v981_v17 = vpop.eup %980 }
 0x260   : > { %730 = vperm.xlu0 %956, %v981_v17   ;;  %v700_v17 = vlaneseq }
 0x261   : > { %v983_v18 = vpop.eup %982 }
 0x262   : > { %745 = vperm.xlu1 %957, %v983_v18   ;;  %v690_v18 = vrot.slane %v689_v11, 2  ;;  %v701_v24 = vshrl.u32 %v700_v17, 7 }
 0x263   : > { %v985_v23 = vpop.eup %984 }
 0x264   : > { %740 = vperm.xlu0 %956, %v985_v23   ;;  %v678_v23 = vadd.f32 %v677_v12, %v676_v8  ;;  %v702_v27 = vsub.s32 0, %v701_v24 }
 0x265   : > { %v987_v25 = vpop.eup %986 }
 0x266   : > { %755 = vperm.xlu1 %957, %v987_v25   ;;  %v691_v25 = vadd.f32 %v690_v18, %v689_v11  ;;  %v703_v31 = vrot.slane %v698_v29, %v702_v27 }
 0x267   : > { %v989_v26 = vpop.eup %988 }
 0x268   : > { %750 = vperm.xlu0 %956, %v989_v26   ;;  %v679_v26 = vrot.slane %v678_v23, 1  ;;  %v692_v28 = vrot.slane %v691_v25, 1 }
 0x26a   : > { %v680_v30 = vadd.f32 %v679_v26, %v678_v23  ;;  %v693_v32 = vadd.f32 %v692_v28, %v691_v25 }
 0x26c   : > { %v704_v33 = vadd.f32 %v703_v31, %v680_v30  ;;  %v705_v34 = vadd.f32 %v703_v31, %v693_v32 }
 0x26e   : > { %v888_v35 = vmul.f32 -1.442695, %v704_v33  ;;  %v889_v36 = vmul.f32 -1.442695, %v705_v34 }
 0x270   : > { %990 = vpow2.f32 %v888_v35 }
 0x271   : > { %992 = vpow2.f32 %v889_v36 }
 0x27d   : > { %v991_v37 = vpop.eup %990 }
 0x27e   : > { %v993_v38 = vpop.eup %992  ;;  %v712_v39 = vadd.f32 1.0, %v991_v37 }
 0x27f   : > { %v713_v40 = vadd.f32 1.0, %v993_v38 }
 0x280   : > { %994 = vrcp.f32 %v712_v39 }
 0x281   : > { %996 = vrcp.f32 %v713_v40 }
 0x28d   : > { %v995_v41 = vpop.eup %994 }
 0x28e   : > { %v997_v42 = vpop.eup %996 }
 0x2d5   : > { %v726_v43 = vpop.permute.xlu1 %725 }
 0x2d6   : > { %v760_v44 = vadd.f32 %v995_v41, %v726_v43  ;;  %v761_v45 = vadd.f32 %v997_v42, %v726_v43 }
 0x2d7   : > { %v721_v46 = vpop.permute.xlu0 %720 }
 0x2d8   : > { %v776_v47 = vmul.f32 %v760_v44, %v1104_v19  ;;  %v777_v48 = vmul.f32 %v761_v45, %v1106_v20  ;;  %v758_v49 = vadd.f32 %v995_v41, %v721_v46  ;;  %v759_v50 = vadd.f32 %v997_v42, %v721_v46 }
 0x2d9   : > { %v736_v51 = vpop.permute.xlu1 %735 }
 0x2da   : > { %792 = vst [vmem:[%s1223_s20 + $0x10] sm:$0xff] %v776_v47  ;;  %793 = vst [vmem:[%s1223_s20 + $0x18] sm:$0xff] %v777_v48  ;;  %v774_v52 = vmul.f32 %v758_v49, %v1108_v21  ;;  %v775_v53 = vmul.f32 %v759_v50, %v1110_v22  ;;  %v764_v54 = vadd.f32 %v995_v41, %v736_v51 }
 0x2db   : > { %v765_v55 = vadd.f32 %v997_v42, %v736_v51  ;;  %v731_v56 = vpop.permute.xlu0 %730 }
 0x2dc   : > { %790 = vst [vmem:[%s1223_s20] sm:$0xff] %v774_v52  ;;  %791 = vst [vmem:[%s1223_s20 + $0x8] sm:$0xff] %v775_v53  ;;  %v780_v19 = vmul.f32 %v764_v54, %v1092_v13  ;;  %v762_v57 = vadd.f32 %v995_v41, %v731_v56  ;;  %v763_v58 = vadd.f32 %v997_v42, %v731_v56 }
 0x2dd   : > { %v781_v20 = vmul.f32 %v765_v55, %v1094_v14  ;;  %v746_v59 = vpop.permute.xlu1 %745 }
 0x2de   : > { %796 = vst [vmem:[%s1223_s20 + $0x30] sm:$0xff] %v780_v19  ;;  %v778_v21 = vmul.f32 %v762_v57, %v1096_v15  ;;  %v779_v22 = vmul.f32 %v763_v58, %v1098_v16  ;;  %v768_v60 = vadd.f32 %v995_v41, %v746_v59  ;;  %v769_v61 = vadd.f32 %v997_v42, %v746_v59 }
 0x2df   : > { %797 = vst [vmem:[%s1223_s20 + $0x38] sm:$0xff] %v781_v20  ;;  %v741_v62 = vpop.permute.xlu0 %740 }
 0x2e0   : > { %794 = vst [vmem:[%s1223_s20 + $0x20] sm:$0xff] %v778_v21  ;;  %795 = vst [vmem:[%s1223_s20 + $0x28] sm:$0xff] %v779_v22  ;;  %v784_v13 = vmul.f32 %v768_v60, %v1078_v6  ;;  %v785_v14 = vmul.f32 %v769_v61, %v1080_v7  ;;  %v766_v63 = vadd.f32 %v995_v41, %v741_v62 }
 0x2e1   : > { %v767_v0 = vadd.f32 %v997_v42, %v741_v62  ;;  %v756_v4 = vpop.permute.xlu1 %755 }
 0x2e2   : > { %800 = vst [vmem:[%s1223_s20 + $0x50] sm:$0xff] %v784_v13  ;;  %801 = vst [vmem:[%s1223_s20 + $0x58] sm:$0xff] %v785_v14  ;;  %v782_v15 = vmul.f32 %v766_v63, %v1084_v9  ;;  %v772_v8 = vadd.f32 %v995_v41, %v756_v4  ;;  %v773_v11 = vadd.f32 %v997_v42, %v756_v4 }
 0x2e3   : > { %v783_v16 = vmul.f32 %v767_v0, %v1086_v10  ;;  %v751_v12 = vpop.permute.xlu0 %750 }
 0x2e4   : > { %798 = vst [vmem:[%s1223_s20 + $0x40] sm:$0xff] %v782_v15  ;;  %v788_v6 = vmul.f32 %v772_v8, %v1068_v1  ;;  %v789_v7 = vmul.f32 %v773_v11, %v1070_v2  ;;  %v770_v17 = vadd.f32 %v995_v41, %v751_v12  ;;  %v771_v18 = vadd.f32 %v997_v42, %v751_v12 }
 0x2e5   : > { %799 = vst [vmem:[%s1223_s20 + $0x48] sm:$0xff] %v783_v16 }
 0x2e6   : > { %804 = vst [vmem:[%s1223_s20 + $0x70] sm:$0xff] %v788_v6  ;;  %805 = vst [vmem:[%s1223_s20 + $0x78] sm:$0xff] %v789_v7  ;;  %v786_v23 = vmul.f32 %v770_v17, %v1072_v3  ;;  %v787_v9 = vmul.f32 %v771_v18, %v1076_v5 }
 0x2e8   : > { %802 = vst [vmem:[%s1223_s20 + $0x60] sm:$0xff] %v786_v23  ;;  %803 = vst [vmem:[%s1223_s20 + $0x68] sm:$0xff] %v787_v9 }
 0x2e9 PF: > { %s19_s26 = sadd.s32 1, %s1004_s26  }
 0x2ea   : > { %p16_p4 = scmp.ge.s32.totalorder %s19_s26, 4  }
 0x2ec   :  { %18 = sbr.rel (!%p16_p4) target bundleno = 3 (0x3), region = 78 }

</bundles_post_ra>
